<compile_context>
chip_gen: v6e
topology: v6e:2x2x1
jax: 0.10.0
libtpu: 0.0.40
codegen_flags: <defaults>
</compile_context>

<pallas_src>
import jax
import jax.numpy as jnp
from jax import lax
from jax.experimental import pallas as pl
from jax.experimental.pallas import tpu as pltpu

# Hyper-parameters (names follow DQN_single.__init__).
HISTORY_LENGTH = 4    # conv in_channels
BATCH_SIZE     = 8    # conv out_channels (the torch code reuses the name "batch_size")
STATE_DIM      = 4    # conv kernel size == conv output spatial extent
ACTION_LENGTH  = 6
N              = 2    # number of samples pushed through forward()

LANE = 128            # TPU lane width; f2 output is padded to this for a dense store


def dqn_single_kernel(x_ref, wbig_ref, bcflat_ref, w1_ref, b1_ref,
                      w2_ref, b2_ref, out_ref):
    # conv (+ channel-major flatten) as one matmul: [N, R*P] @ [R*P, Cout*P]
    conv = jnp.dot(x_ref[...], wbig_ref[...],
                   preferred_element_type=jnp.float32) + bcflat_ref[...]
    conv = jnp.maximum(conv, 0.0)                                   # [N, 128]
    # f1: [N, 128] @ [128, 256] + b1, ReLU
    h = jnp.dot(conv, w1_ref[...],
                preferred_element_type=jnp.float32) + b1_ref[...]
    h = jnp.maximum(h, 0.0)                                         # [N, 256]
    # f2 (lane-padded): [N, 256] @ [256, 128] + b2  -> single dense store
    out_ref[...] = jnp.dot(h, w2_ref[...],
                           preferred_element_type=jnp.float32) + b2_ref[...]


def im2col(x, k):
    """x: [N, C, H, W] -> patches [N, C*k*k, out_h*out_w] in (cin, ki, kj) order."""
    n, c, h, w = x.shape
    oh, ow = h - k + 1, w - k + 1
    cols = []
    for i in range(k):
        for j in range(k):
            cols.append(x[:, :, i:i + oh, j:j + ow])        # [N, C, oh, ow]
    p = jnp.stack(cols, axis=2)                              # [N, C, k*k, oh, ow]
    return p.reshape(n, c * k * k, oh * ow)                  # [N, R, P]


def dqn_single_forward(x, params):
    wc, bc, w1, b1, w2, b2 = params
    cout, cin, k, _ = wc.shape
    a = w2.shape[1]

    patches = im2col(x, k)                                   # [N, R, P]
    n, r, p = patches.shape
    x_flat = patches.reshape(n, r * p)                       # [N, R*P] = [N, 1024]

    # Expanded conv weight: Wbig[r*P + p, o*P + q] = wc[o, r] * (p == q)
    wc_flat = wc.reshape(cout, r)                            # [Cout, R] (OIHW flatten)
    eye_p = jnp.eye(p, dtype=jnp.float32)
    wbig = (wc_flat.T[:, None, :, None] *
            eye_p[None, :, None, :]).reshape(r * p, cout * p)   # [R*P, Cout*P]
    bc_flat = jnp.broadcast_to(bc[:, None], (cout, p)).reshape(1, cout * p)

    # Pad f2 to a full lane width for a dense final store; slice outside the kernel.
    w2_pad = jnp.zeros((w2.shape[0], LANE), jnp.float32).at[:, :a].set(w2)
    b2_pad = jnp.zeros((1, LANE), jnp.float32).at[0, :a].set(b2)

    vmem = pl.BlockSpec(memory_space=pltpu.MemorySpace.VMEM)
    out_pad = pl.pallas_call(
        dqn_single_kernel,
        out_shape=jax.ShapeDtypeStruct((n, LANE), jnp.float32),
        in_specs=[vmem] * 7,
        out_specs=vmem,
    )(x_flat, wbig, bc_flat, w1, b1.reshape(1, -1), w2_pad, b2_pad)
    return out_pad[:, :a]


def reference_forward(x, params):
    """Pure-JAX reference mirroring the PyTorch forward (NCHW)."""
    wc, bc, w1, b1, w2, b2 = params
    y = lax.conv_general_dilated(x, wc, (1, 1), "VALID",
                                 dimension_numbers=("NCHW", "OIHW", "NCHW"))
    y = jnp.maximum(y + bc[None, :, None, None], 0.0)
    y = y.reshape(y.shape[0], -1)                            # channel-major flatten
    h = jnp.maximum(y @ w1 + b1, 0.0)
    return h @ w2 + b2


if __name__ == "__main__":
    h_img = w_img = 2 * STATE_DIM - 1        # conv output spatial == STATE_DIM
    f_in = BATCH_SIZE * STATE_DIM * STATE_DIM

    key = jax.random.PRNGKey(0)
    ks = jax.random.split(key, 7)
    x  = jax.random.normal(ks[0], (N, HISTORY_LENGTH, h_img, w_img), jnp.float32)
    wc = jax.random.normal(ks[1], (BATCH_SIZE, HISTORY_LENGTH, STATE_DIM, STATE_DIM),
                           jnp.float32) * 0.1
    bc = jax.random.normal(ks[2], (BATCH_SIZE,), jnp.float32) * 0.1
    w1 = jax.random.normal(ks[3], (f_in, 256), jnp.float32) * 0.05
    b1 = jax.random.normal(ks[4], (256,), jnp.float32) * 0.05
    w2 = jax.random.normal(ks[5], (256, ACTION_LENGTH), jnp.float32) * 0.05
    b2 = jax.random.normal(ks[6], (ACTION_LENGTH,), jnp.float32) * 0.05
    params = (wc, bc, w1, b1, w2, b2)

    out = jax.block_until_ready(dqn_single_forward(x, params))
    ref = reference_forward(x, params)

    assert out.shape == (N, ACTION_LENGTH), out.shape
    assert jnp.allclose(out, ref, atol=1e-3, rtol=1e-3), (out, ref)
    print("KERNEL_OK")
</pallas_src>

<mosaic_0001>
module attributes {stable_mosaic.version = 11 : i64} {
  func.func @dqn_single_kernel(%arg0: memref<2x1024xf32, #tpu.memory_space<vmem>>, %arg1: memref<1024x128xf32, #tpu.memory_space<vmem>>, %arg2: memref<1x128xf32, #tpu.memory_space<vmem>>, %arg3: memref<128x256xf32, #tpu.memory_space<vmem>>, %arg4: memref<1x256xf32, #tpu.memory_space<vmem>>, %arg5: memref<256x128xf32, #tpu.memory_space<vmem>>, %arg6: memref<1x128xf32, #tpu.memory_space<vmem>>, %arg7: memref<2x128xf32, #tpu.memory_space<vmem>>) attributes {dimension_semantics = [], scalar_prefetch = 0 : i64, scratch_operands = 0 : i64, tpu.core_type = #tpu.core_type<tc>} {
    %c0 = arith.constant 0 : index
    %c0_0 = arith.constant 0 : index
    %0 = vector.load %arg0[%c0, %c0_0] : memref<2x1024xf32, #tpu.memory_space<vmem>>, vector<2x1024xf32>
    %c0_1 = arith.constant 0 : index
    %c0_2 = arith.constant 0 : index
    %1 = vector.load %arg1[%c0_1, %c0_2] : memref<1024x128xf32, #tpu.memory_space<vmem>>, vector<1024x128xf32>
    %cst = arith.constant dense<0.000000e+00> : vector<2x128xf32>
    %2 = tpu.matmul %0, %1, %cst {dimension_numbers = #tpu.dot_dimension_numbers<[1], [0], [0], [1], [0, 0, 1, 1], [], []>} : vector<2x1024xf32>, vector<1024x128xf32>, vector<2x128xf32> -> vector<2x128xf32>
    %c0_3 = arith.constant 0 : index
    %c0_4 = arith.constant 0 : index
    %3 = vector.load %arg2[%c0_3, %c0_4] : memref<1x128xf32, #tpu.memory_space<vmem>>, vector<1x128xf32>
    %4 = vector.broadcast %3 : vector<1x128xf32> to vector<2x128xf32>
    %5 = arith.addf %2, %4 : vector<2x128xf32>
    %cst_5 = arith.constant 0.000000e+00 : f32
    %6 = vector.broadcast %cst_5 : f32 to vector<2x128xf32>
    %7 = arith.maximumf %5, %6 : vector<2x128xf32>
    %c0_6 = arith.constant 0 : index
    %c0_7 = arith.constant 0 : index
    %8 = vector.load %arg3[%c0_6, %c0_7] : memref<128x256xf32, #tpu.memory_space<vmem>>, vector<128x256xf32>
    %cst_8 = arith.constant dense<0.000000e+00> : vector<2x256xf32>
    %9 = tpu.matmul %7, %8, %cst_8 {dimension_numbers = #tpu.dot_dimension_numbers<[1], [0], [0], [1], [0, 0, 1, 1], [], []>} : vector<2x128xf32>, vector<128x256xf32>, vector<2x256xf32> -> vector<2x256xf32>
    %c0_9 = arith.constant 0 : index
    %c0_10 = arith.constant 0 : index
    %10 = vector.load %arg4[%c0_9, %c0_10] : memref<1x256xf32, #tpu.memory_space<vmem>>, vector<1x256xf32>
    %11 = vector.broadcast %10 : vector<1x256xf32> to vector<2x256xf32>
    %12 = arith.addf %9, %11 : vector<2x256xf32>
    %cst_11 = arith.constant 0.000000e+00 : f32
    %13 = vector.broadcast %cst_11 : f32 to vector<2x256xf32>
    %14 = arith.maximumf %12, %13 : vector<2x256xf32>
    %c0_12 = arith.constant 0 : index
    %c0_13 = arith.constant 0 : index
    %15 = vector.load %arg5[%c0_12, %c0_13] : memref<256x128xf32, #tpu.memory_space<vmem>>, vector<256x128xf32>
    %cst_14 = arith.constant dense<0.000000e+00> : vector<2x128xf32>
    %16 = tpu.matmul %14, %15, %cst_14 {dimension_numbers = #tpu.dot_dimension_numbers<[1], [0], [0], [1], [0, 0, 1, 1], [], []>} : vector<2x256xf32>, vector<256x128xf32>, vector<2x128xf32> -> vector<2x128xf32>
    %c0_15 = arith.constant 0 : index
    %c0_16 = arith.constant 0 : index
    %17 = vector.load %arg6[%c0_15, %c0_16] : memref<1x128xf32, #tpu.memory_space<vmem>>, vector<1x128xf32>
    %18 = vector.broadcast %17 : vector<1x128xf32> to vector<2x128xf32>
    %19 = arith.addf %16, %18 : vector<2x128xf32>
    %c0_17 = arith.constant 0 : index
    %c0_18 = arith.constant 0 : index
    %20 = vector.load %arg7[%c0_17, %c0_18] : memref<2x128xf32, #tpu.memory_space<vmem>>, vector<2x128xf32>
    tpu.vector_store %arg7[%c0_17, %c0_18], %19 {strides = array<i32>} : memref<2x128xf32, #tpu.memory_space<vmem>>, vector<2x128xf32>,
    return
  }
}

</mosaic_0001>

<bundles_post_ra>
// kernel: tpu_custom_call.1
= control target key start
LH: loop header
LB: loop body
LE: loop exit
PB: predicated region body
PF: predicated region fallthrough
CT: control target
= control target key end

     0   :  { %12 = vsyncpa [#allocation3], 0  ;;  %s1176_s0 = inlined_call_operand.hbm [shape: f32[2,1024], index: 0, kind: input, shape index: {}]   ;;  %s1177_s1 = inlined_call_operand.hbm [shape: f32[1024,128], index: 1, kind: input, shape index: {}]   ;;  %s1178_s2 = inlined_call_operand.vmem [shape: f32[1,128], index: 2, kind: input, shape index: {}]   ;;  %s1179_s3 = inlined_call_operand.hbm [shape: f32[128,256], index: 3, kind: input, shape index: {}]   ;;  %s1180_s4 = inlined_call_operand.vmem [shape: f32[1,256], index: 4, kind: input, shape index: {}]   ;;  %s1181_s5 = inlined_call_operand.hbm [shape: f32[256,128], index: 5, kind: input, shape index: {}]   ;;  %s1182_s6 = inlined_call_operand.vmem [shape: f32[1,128], index: 6, kind: input, shape index: {}]   ;;  %s1183_s7 = inlined_call_operand.hbm [shape: f32[2,128], index: 7, kind: output, shape index: {}]  }
   0x1   :  { %13 = vsyncpa [#allocation6], 0 }
   0x2   :  { %14 = vsyncpa [#allocation9], 0 }
   0x3   :  { %15 = vsyncpa [#allocation4], 0  ;;  %s1084_s24 = smov [#allocation5]  }
   0x4   :  { %s31_s25 = sshll.u32 %s1084_s24, 4  ;;  %s32_s25 = int_to_ptr.vmem [resolvable:$true] %s31_s25 }
   0x5   :  { %s984_s26 = scalar_lea.vmem %s32_s25, 16384  ;;  %p989_p1 = scmp.lt.s32.totalorder %s32_s25, %s32_s25 }
   0x6   :  { %p985_p0 = scmp.ne.s32.totalorder %s32_s25, %s984_s26  ;;  %p990_p2 = scmp.lt.s32.totalorder %s984_s26, %s984_s26 }
   0x8   :  { %p991_p3 = por %p990_p2, %p989_p1 }
   0xa   :  { %p992_p4 = pnand %p991_p3, %p985_p0 }
   0xc   :  { %995 = shalt.err (!%p992_p4)
}
   0xd   :  { %s1085_s27 = smov 128   ;;  %s1086_s28 = smov 8  }
   0xe   :  { %37 = dma.hbm_to_vmem [thread:$0]  %s1177_s1, 16384, %s32_s25, [#allocation6], %s1085_s27, %s1085_s27, %s1086_s28  }
   0xf   :  { %s1087_s8 = smov [#allocation2]   ;;  %s1088_s10 = smov [#allocation7]  }
  0x10   :  { %s22_s9 = sshll.u32 %s1087_s8, 4  ;;  %s45_s11 = sshll.u32 %s1088_s10, 4  ;;  %s23_s9 = int_to_ptr.vmem [resolvable:$true] %s22_s9  ;;  %s46_s11 = int_to_ptr.vmem [resolvable:$true] %s45_s11 }
  0x11   :  { %s1004_s12 = scalar_lea.vmem %s23_s9, 256  ;;  %p1009_p6 = scmp.lt.s32.totalorder %s23_s9, %s23_s9 }
  0x12   :  { %p1005_p5 = scmp.ne.s32.totalorder %s23_s9, %s1004_s12  ;;  %p1010_p7 = scmp.lt.s32.totalorder %s1004_s12, %s1004_s12 }
  0x14   :  { %p1011_p8 = por %p1010_p7, %p1009_p6 }
  0x16   :  { %p1012_p9 = pnand %p1011_p8, %p1005_p5 }
  0x18   :  { %1015 = shalt.err (!%p1012_p9)
}
  0x19   :  { %25 = dma.hbm_to_vmem [thread:$0]  %s1176_s0, 256, %s23_s9, [#allocation3]  }
  0x1a   :  { %s1024_s15 = scalar_lea.vmem %s46_s11, 4096  ;;  %p1029_p11 = scmp.lt.s32.totalorder %s46_s11, %s46_s11 }
  0x1b   :  { %p1025_p10 = scmp.ne.s32.totalorder %s46_s11, %s1024_s15  ;;  %p1030_p12 = scmp.lt.s32.totalorder %s1024_s15, %s1024_s15 }
  0x1d   :  { %p1031_p13 = por %p1030_p12, %p1029_p11 }
  0x1f   :  { %p1032_p0 = pnand %p1031_p13, %p1025_p10 }
  0x21   :  { %1035 = shalt.err (!%p1032_p0)
}
  0x22   :  { %s1089_s1 = smov 256   ;;  %s1090_s16 = smov 16  }
  0x23   :  { %51 = dma.hbm_to_vmem [thread:$0]  %s1179_s3, 4096, %s46_s11, [#allocation6], %s1089_s1, %s1089_s1, %s1090_s16  }
  0x24   :  { %s1091_s19 = smov [#allocation8]  }
  0x25   :  { %s59_s20 = sshll.u32 %s1091_s19, 4  ;;  %s60_s20 = int_to_ptr.vmem [resolvable:$true] %s59_s20 }
  0x26   :  { %s1044_s21 = scalar_lea.vmem %s60_s20, 4096  ;;  %p1049_p2 = scmp.lt.s32.totalorder %s60_s20, %s60_s20 }
  0x27   :  { %p1045_p1 = scmp.ne.s32.totalorder %s60_s20, %s1044_s21  ;;  %p1050_p3 = scmp.lt.s32.totalorder %s1044_s21, %s1044_s21 }
  0x29   :  { %p1051_p4 = por %p1050_p3, %p1049_p2 }
  0x2b   :  { %p1052_p5 = pnand %p1051_p4, %p1045_p1 }
  0x2d   :  { %1055 = shalt.err (!%p1052_p5)
}
  0x2e   :  { %65 = dma.hbm_to_vmem [thread:$0]  %s1181_s5, 4096, %s60_s20, [#allocation9], %s1085_s27, %s1085_s27, %s1086_s28  }
  0x2f   :  { %1076 = dma.done.wait [#allocation3], 256  }
  0x30   :  { %1077 = vsyncadd [#allocation3], 4294967040 }
  0x31   :  { %1078 = dma.done.wait [#allocation6], 20480  }
  0x32   :  { %1079 = vsyncadd [#allocation6], 4294946816 }
  0x33   :  { %1080 = dma.done.wait [#allocation9], 4096  }
  0x34   :  { %1081 = vsyncadd [#allocation9], 4294963200  ;;  %v113_v0 = vld [vmem:[#allocation5 + $0xf8] sm:$0xff]  ;;  %v112_v4 = vld [vmem:[#allocation5 + $0xf0] sm:$0xff]  ;;  %v1092_v30 = vmov 1983009808   ;;  %v223_v32 = vlaneseq }
  0x35   :  { %v145_v1 = vld [vmem:[#allocation5 + $0x1f8] sm:$0xff]  ;;  %788 = vmatprep.subr.mxu0 %v113_v0  ;;  %v144_v5 = vld [vmem:[#allocation5 + $0x1f0] sm:$0xff]  ;;  %v111_v8 = vld [vmem:[#allocation5 + $0xe8] sm:$0xff]  ;;  %v221_v31 = vunpack.c.l.s4 %v1092_v30  ;;  %s1094_s26 = smov [#allocation10]  }
  0x36   :  { %v97_v2 = vld [vmem:[#allocation5 + $0x78] sm:$0xff]  ;;  %823 = vmatprep.subr.mxu1 %v145_v1  ;;  %v96_v6 = vld [vmem:[#allocation5 + $0x70] sm:$0xff]  ;;  %v143_v9 = vld [vmem:[#allocation5 + $0x1e8] sm:$0xff]  ;;  %v1153_v42 = vshrl.u32 %v223_v32, 7 }
  0x37   :  { %v129_v3 = vld [vmem:[#allocation5 + $0x178] sm:$0xff]  ;;  %789 = vmatpush3.msra.mxu0 %v97_v2  ;;  %v128_v7 = vld [vmem:[#allocation5 + $0x170] sm:$0xff]  ;;  %v95_v10 = vld [vmem:[#allocation5 + $0x68] sm:$0xff]  ;;  %v222_v41 = vunpack.c.0.s8 %v221_v31 }
  0x38   :  { %824 = vmatpush3.msra.mxu1 %v129_v3  ;;  %790 = vmatprep.subr.mxu0 %v112_v4  ;;  %v127_v11 = vld [vmem:[#allocation5 + $0x168] sm:$0xff]  ;;  %v110_v12 = vld [vmem:[#allocation5 + $0xe0] sm:$0xff]  ;;  %v109_v16 = vld [vmem:[#allocation5 + $0xd8] sm:$0xff] }
  0x39   :  { %825 = vmatprep.subr.mxu1 %v144_v5  ;;  %791 = vmatpush3.msra.mxu0 %v96_v6  ;;  %v142_v13 = vld [vmem:[#allocation5 + $0x1e0] sm:$0xff]  ;;  %v141_v17 = vld [vmem:[#allocation5 + $0x1d8] sm:$0xff]  ;;  %v108_v20 = vld [vmem:[#allocation5 + $0xd0] sm:$0xff]  ;;  %v1156_v51 = vsub.s32 %v222_v41, %v1153_v42 }
  0x3a   :  { %826 = vmatpush3.msra.mxu1 %v128_v7  ;;  %792 = vmatprep.subr.mxu0 %v111_v8  ;;  %v94_v14 = vld [vmem:[#allocation5 + $0x60] sm:$0xff]  ;;  %v93_v18 = vld [vmem:[#allocation5 + $0x58] sm:$0xff]  ;;  %v140_v21 = vld [vmem:[#allocation5 + $0x1d0] sm:$0xff] }
  0x3b   :  { %827 = vmatprep.subr.mxu1 %v143_v9  ;;  %v126_v15 = vld [vmem:[#allocation5 + $0x160] sm:$0xff]  ;;  %793 = vmatpush3.msra.mxu0 %v95_v10  ;;  %v125_v19 = vld [vmem:[#allocation5 + $0x158] sm:$0xff]  ;;  %v92_v22 = vld [vmem:[#allocation5 + $0x50] sm:$0xff] }
  0x3c   :  { %828 = vmatpush3.msra.mxu1 %v127_v11  ;;  %794 = vmatprep.subr.mxu0 %v110_v12  ;;  %v124_v23 = vld [vmem:[#allocation5 + $0x150] sm:$0xff]  ;;  %v107_v24 = vld [vmem:[#allocation5 + $0xc8] sm:$0xff]  ;;  %v106_v28 = vld [vmem:[#allocation5 + $0xc0] sm:$0xff] }
  0x3d   :  { %829 = vmatprep.subr.mxu1 %v142_v13  ;;  %795 = vmatpush3.msra.mxu0 %v94_v14  ;;  %v139_v25 = vld [vmem:[#allocation5 + $0x1c8] sm:$0xff]  ;;  %v138_v29 = vld [vmem:[#allocation5 + $0x1c0] sm:$0xff]  ;;  %v105_v35 = vld [vmem:[#allocation5 + $0xb8] sm:$0xff] }
  0x3e   :  { %830 = vmatpush3.msra.mxu1 %v126_v15  ;;  %796 = vmatprep.subr.mxu0 %v109_v16  ;;  %v91_v26 = vld [vmem:[#allocation5 + $0x48] sm:$0xff]  ;;  %v90_v33 = vld [vmem:[#allocation5 + $0x40] sm:$0xff]  ;;  %v137_v36 = vld [vmem:[#allocation5 + $0x1b8] sm:$0xff] }
  0x3f   :  { %831 = vmatprep.subr.mxu1 %v141_v17  ;;  %797 = vmatpush3.msra.mxu0 %v93_v18  ;;  %v123_v27 = vld [vmem:[#allocation5 + $0x148] sm:$0xff]  ;;  %v122_v34 = vld [vmem:[#allocation5 + $0x140] sm:$0xff]  ;;  %v89_v37 = vld [vmem:[#allocation5 + $0x38] sm:$0xff] }
  0x40   :  { %832 = vmatpush3.msra.mxu1 %v125_v19  ;;  %798 = vmatprep.subr.mxu0 %v108_v20  ;;  %v121_v38 = vld [vmem:[#allocation5 + $0x138] sm:$0xff]  ;;  %v104_v39 = vld [vmem:[#allocation5 + $0xb0] sm:$0xff]  ;;  %v103_v45 = vld [vmem:[#allocation5 + $0xa8] sm:$0xff] }
  0x41   :  { %833 = vmatprep.subr.mxu1 %v140_v21  ;;  %799 = vmatpush3.msra.mxu0 %v92_v22  ;;  %v136_v40 = vld [vmem:[#allocation5 + $0x1b0] sm:$0xff]  ;;  %v135_v46 = vld [vmem:[#allocation5 + $0x1a8] sm:$0xff]  ;;  %v102_v49 = vld [vmem:[#allocation5 + $0xa0] sm:$0xff] }
  0x42   :  { %834 = vmatpush3.msra.mxu1 %v124_v23  ;;  %800 = vmatprep.subr.mxu0 %v107_v24  ;;  %v88_v43 = vld [vmem:[#allocation5 + $0x30] sm:$0xff]  ;;  %v87_v47 = vld [vmem:[#allocation5 + $0x28] sm:$0xff]  ;;  %v134_v50 = vld [vmem:[#allocation5 + $0x1a0] sm:$0xff] }
  0x43   :  { %835 = vmatprep.subr.mxu1 %v139_v25  ;;  %801 = vmatpush3.msra.mxu0 %v91_v26  ;;  %v120_v44 = vld [vmem:[#allocation5 + $0x130] sm:$0xff]  ;;  %v119_v48 = vld [vmem:[#allocation5 + $0x128] sm:$0xff]  ;;  %v86_v52 = vld [vmem:[#allocation5 + $0x20] sm:$0xff] }
  0x44   :  { %836 = vmatpush3.msra.mxu1 %v123_v27  ;;  %802 = vmatprep.subr.mxu0 %v106_v28  ;;  %v118_v53 = vld [vmem:[#allocation5 + $0x120] sm:$0xff]  ;;  %v80_v54 = vld [vmem:[#allocation2] sm:$0xff]  ;;  %v101_v55 = vld [vmem:[#allocation5 + $0x98] sm:$0xff] }
  0x45   :  { %837 = vmatprep.subr.mxu1 %v138_v29  ;;  %803 = vmatpush3.msra.mxu0 %v90_v33  ;;  %v133_v56 = vld [vmem:[#allocation5 + $0x198] sm:$0xff]  ;;  %v219_v57 = vcombine.high %v80_v54, %v80_v54  ;;  %v100_v60 = vld [vmem:[#allocation5 + $0x90] sm:$0xff]  ;;  %v226_v62 = vrot.slane %v80_v54, %v1156_v51  ;;  %v99_v1 = vld [vmem:[#allocation5 + $0x88] sm:$0xff] }
  0x46   :  { %838 = vmatpush3.msra.mxu1 %v122_v34  ;;  %804 = vmatprep.subr.mxu0 %v105_v35  ;;  %v85_v58 = vld [vmem:[#allocation5 + $0x18] sm:$0xff]  ;;  %v132_v61 = vld [vmem:[#allocation5 + $0x190] sm:$0xff]  ;;  %v131_v2 = vld [vmem:[#allocation5 + $0x188] sm:$0xff] }
  0x47   :  { %839 = vmatprep.subr.mxu1 %v137_v36  ;;  %805 = vmatpush3.msra.mxu0 %v89_v37  ;;  %v117_v59 = vld [vmem:[#allocation5 + $0x118] sm:$0xff]  ;;  %v84_v63 = vld [vmem:[#allocation5 + $0x10] sm:$0xff]  ;;  %v233_v3 = vrot.slane %v219_v57, %v1156_v51  ;;  %v83_v4 = vld [vmem:[#allocation5 + $0x8] sm:$0xff]  ;;  %v234_v8 = vcombine.high %v226_v62, %v226_v62 }
  0x48   :  { %840 = vmatpush3.msra.mxu1 %v121_v38  ;;  %806 = vmatprep.subr.mxu0 %v104_v39  ;;  %v116_v0 = vld [vmem:[#allocation5 + $0x110] sm:$0xff]  ;;  %v115_v5 = vld [vmem:[#allocation5 + $0x108] sm:$0xff]  ;;  %v98_v6 = vld [vmem:[#allocation5 + $0x80] sm:$0xff] }
  0x49   :  { %841 = vmatprep.subr.mxu1 %v136_v40  ;;  %807 = vmatpush3.msra.mxu0 %v88_v43  ;;  %v130_v7 = vld [vmem:[#allocation5 + $0x180] sm:$0xff]  ;;  %v235_v11 = vcombine.high %v233_v3, %v233_v3  ;;  %v177_v12 = vld [vmem:[#allocation5 + $0x2f8] sm:$0xff]  ;;  %v176_v16 = vld [vmem:[#allocation5 + $0x2f0] sm:$0xff] }
  0x4a   :  { %842 = vmatpush3.msra.mxu1 %v120_v44  ;;  %808 = vmatprep.subr.mxu0 %v103_v45  ;;  %v82_v9 = vld [vmem:[#allocation5] sm:$0xff]  ;;  %v209_v13 = vld [vmem:[#allocation5 + $0x3f8] sm:$0xff]  ;;  %v208_v17 = vld [vmem:[#allocation5 + $0x3f0] sm:$0xff] }
  0x4b   :  { %843 = vmatprep.subr.mxu1 %v135_v46  ;;  %809 = vmatpush3.msra.mxu0 %v87_v47  ;;  %v114_v10 = vld [vmem:[#allocation5 + $0x100] sm:$0xff]  ;;  %v161_v14 = vld [vmem:[#allocation5 + $0x278] sm:$0xff]  ;;  %v160_v18 = vld [vmem:[#allocation5 + $0x270] sm:$0xff] }
  0x4c   :  { %844 = vmatpush3.msra.mxu1 %v119_v48  ;;  %810 = vmatprep.subr.mxu0 %v102_v49  ;;  %v193_v15 = vld [vmem:[#allocation5 + $0x378] sm:$0xff]  ;;  %v192_v19 = vld [vmem:[#allocation5 + $0x370] sm:$0xff]  ;;  %v175_v20 = vld [vmem:[#allocation5 + $0x2e8] sm:$0xff] }
  0x4d   :  { %845 = vmatprep.subr.mxu1 %v134_v50  ;;  %811 = vmatpush3.msra.mxu0 %v86_v52  ;;  %v207_v21 = vld [vmem:[#allocation5 + $0x3e8] sm:$0xff]  ;;  %v174_v24 = vld [vmem:[#allocation5 + $0x2e0] sm:$0xff]  ;;  %v173_v28 = vld [vmem:[#allocation5 + $0x2d8] sm:$0xff] }
  0x4e   :  { %846 = vmatpush3.msra.mxu1 %v118_v53  ;;  %812 = vmatprep.subr.mxu0 %v101_v55  ;;  %v159_v22 = vld [vmem:[#allocation5 + $0x268] sm:$0xff]  ;;  %v206_v25 = vld [vmem:[#allocation5 + $0x3e0] sm:$0xff]  ;;  %v205_v29 = vld [vmem:[#allocation5 + $0x3d8] sm:$0xff] }
  0x4f   :  { %847 = vmatprep.subr.mxu1 %v133_v56  ;;  %813 = vmatpush3.msra.mxu0 %v85_v58  ;;  %v191_v23 = vld [vmem:[#allocation5 + $0x368] sm:$0xff]  ;;  %v158_v26 = vld [vmem:[#allocation5 + $0x260] sm:$0xff]  ;;  %v157_v30 = vld [vmem:[#allocation5 + $0x258] sm:$0xff] }
  0x50   :  { %848 = vmatpush3.msra.mxu1 %v117_v59  ;;  %814 = vmatprep.subr.mxu0 %v100_v60  ;;  %v190_v27 = vld [vmem:[#allocation5 + $0x360] sm:$0xff]  ;;  %v189_v31 = vld [vmem:[#allocation5 + $0x358] sm:$0xff]  ;;  %v172_v32 = vld [vmem:[#allocation5 + $0x2d0] sm:$0xff] }
  0x51   :  { %849 = vmatprep.subr.mxu1 %v132_v61  ;;  %815 = vmatpush3.msra.mxu0 %v84_v63  ;;  %v204_v33 = vld [vmem:[#allocation5 + $0x3d0] sm:$0xff]  ;;  %v171_v36 = vld [vmem:[#allocation5 + $0x2c8] sm:$0xff]  ;;  %v170_v40 = vld [vmem:[#allocation5 + $0x2c0] sm:$0xff] }
  0x52   :  { %850 = vmatpush3.msra.mxu1 %v116_v0  ;;  %816 = vmatprep.subr.mxu0 %v99_v1  ;;  %v156_v34 = vld [vmem:[#allocation5 + $0x250] sm:$0xff]  ;;  %v203_v37 = vld [vmem:[#allocation5 + $0x3c8] sm:$0xff]  ;;  %v202_v41 = vld [vmem:[#allocation5 + $0x3c0] sm:$0xff] }
  0x53   :  { %851 = vmatprep.subr.mxu1 %v131_v2  ;;  %817 = vmatpush3.msra.mxu0 %v83_v4  ;;  %v188_v35 = vld [vmem:[#allocation5 + $0x350] sm:$0xff]  ;;  %v155_v38 = vld [vmem:[#allocation5 + $0x248] sm:$0xff]  ;;  %v154_v43 = vld [vmem:[#allocation5 + $0x240] sm:$0xff] }
  0x54   :  { %852 = vmatpush3.msra.mxu1 %v115_v5  ;;  %818 = vmatprep.subr.mxu0 %v98_v6  ;;  %v187_v39 = vld [vmem:[#allocation5 + $0x348] sm:$0xff]  ;;  %v186_v44 = vld [vmem:[#allocation5 + $0x340] sm:$0xff]  ;;  %v169_v45 = vld [vmem:[#allocation5 + $0x2b8] sm:$0xff] }
  0x55   :  { %853 = vmatprep.subr.mxu1 %v130_v7  ;;  %819 = vmatpush3.msra.mxu0 %v82_v9  ;;  %v201_v46 = vld [vmem:[#allocation5 + $0x3b8] sm:$0xff]  ;;  %v168_v49 = vld [vmem:[#allocation5 + $0x2b0] sm:$0xff]  ;;  %v167_v54 = vld [vmem:[#allocation5 + $0x2a8] sm:$0xff] }
  0x56   :  { %325 = vmatprep.mubr.f32.mxu0 %v234_v8  ;;  %854 = vmatpush3.msra.mxu1 %v114_v10  ;;  %v153_v47 = vld [vmem:[#allocation5 + $0x238] sm:$0xff]  ;;  %v200_v50 = vld [vmem:[#allocation5 + $0x3b0] sm:$0xff]  ;;  %v199_v55 = vld [vmem:[#allocation5 + $0x3a8] sm:$0xff] }
  0x57   :  { %326 = vmatmul.mubr.f32.vlgmr.msra.gmra.mxu0 %v226_v62  ;;  %395 = vmatprep.mubr.f32.mxu1 %v235_v11  ;;  %v185_v48 = vld [vmem:[#allocation5 + $0x338] sm:$0xff]  ;;  %v152_v52 = vld [vmem:[#allocation5 + $0x230] sm:$0xff]  ;;  %v151_v57 = vld [vmem:[#allocation5 + $0x228] sm:$0xff] }
  0x58   :  { %858 = vmatprep.subr.mxu0 %v177_v12  ;;  %893 = vmatprep.subr.mxu1 %v209_v13  ;;  %v184_v53 = vld [vmem:[#allocation5 + $0x330] sm:$0xff]  ;;  %v81_v56 = vld [vmem:[#allocation2 + $0x8] sm:$0xff]  ;;  %v183_v58 = vld [vmem:[#allocation5 + $0x328] sm:$0xff] }
  0x59   :  { %396 = vmatmul.mubr.f32.vlgmr.msra.gmra.mxu1 %v233_v3  ;;  %859 = vmatpush3.msra.mxu0 %v161_v14  ;;  %v166_v59 = vld [vmem:[#allocation5 + $0x2a0] sm:$0xff]  ;;  %v236_v63 = vcombine.high %v81_v56, %v81_v56  ;;  %v165_v0 = vld [vmem:[#allocation5 + $0x298] sm:$0xff]  ;;  %v164_v4 = vld [vmem:[#allocation5 + $0x290] sm:$0xff]  ;;  %v243_v6 = vrot.slane %v81_v56, %v1156_v51 }
  0x5a   :  { %894 = vmatpush3.msra.mxu1 %v193_v15  ;;  %860 = vmatprep.subr.mxu0 %v176_v16  ;;  %v198_v60 = vld [vmem:[#allocation5 + $0x3a0] sm:$0xff]  ;;  %v197_v1 = vld [vmem:[#allocation5 + $0x398] sm:$0xff]  ;;  %v196_v5 = vld [vmem:[#allocation5 + $0x390] sm:$0xff] }
  0x5b   :  { %895 = vmatprep.subr.mxu1 %v208_v17  ;;  %861 = vmatpush3.msra.mxu0 %v160_v18  ;;  %v150_v61 = vld [vmem:[#allocation5 + $0x220] sm:$0xff]  ;;  %v149_v2 = vld [vmem:[#allocation5 + $0x218] sm:$0xff]  ;;  %v148_v7 = vld [vmem:[#allocation5 + $0x210] sm:$0xff]  ;;  %v250_v9 = vrot.slane %v236_v63, %v1156_v51  ;;  %v251_v16 = vcombine.high %v243_v6, %v243_v6 }
  0x5c   :  { %896 = vmatpush3.msra.mxu1 %v192_v19  ;;  %862 = vmatprep.subr.mxu0 %v175_v20  ;;  %v182_v62 = vld [vmem:[#allocation5 + $0x320] sm:$0xff]  ;;  %v181_v3 = vld [vmem:[#allocation5 + $0x318] sm:$0xff]  ;;  %v180_v8 = vld [vmem:[#allocation5 + $0x310] sm:$0xff] }
  0x5d   :  { %897 = vmatprep.subr.mxu1 %v207_v21  ;;  %863 = vmatpush3.msra.mxu0 %v159_v22  ;;  %v163_v10 = vld [vmem:[#allocation5 + $0x288] sm:$0xff]  ;;  %v162_v14 = vld [vmem:[#allocation5 + $0x280] sm:$0xff]  ;;  %v252_v18 = vcombine.high %v250_v9, %v250_v9  ;;  %v573_v19 = vld [vmem:[#allocation7 + $0xf8] sm:$0xff] }
  0x5e   :  { %898 = vmatpush3.msra.mxu1 %v191_v23  ;;  %864 = vmatprep.subr.mxu0 %v174_v24  ;;  %v195_v11 = vld [vmem:[#allocation5 + $0x388] sm:$0xff]  ;;  %v194_v15 = vld [vmem:[#allocation5 + $0x380] sm:$0xff]  ;;  %v572_v20 = vld [vmem:[#allocation7 + $0xf0] sm:$0xff] }
  0x5f   :  { %899 = vmatprep.subr.mxu1 %v206_v25  ;;  %865 = vmatpush3.msra.mxu0 %v158_v26  ;;  %v147_v12 = vld [vmem:[#allocation5 + $0x208] sm:$0xff]  ;;  %v146_v17 = vld [vmem:[#allocation5 + $0x200] sm:$0xff]  ;;  %v569_v23 = vld [vmem:[#allocation7 + $0xd8] sm:$0xff] }
  0x60   :  { %900 = vmatpush3.msra.mxu1 %v190_v27  ;;  %866 = vmatprep.subr.mxu0 %v173_v28  ;;  %v179_v13 = vld [vmem:[#allocation5 + $0x308] sm:$0xff]  ;;  %v178_v51 = vld [vmem:[#allocation5 + $0x300] sm:$0xff]  ;;  %v568_v24 = vld [vmem:[#allocation7 + $0xd0] sm:$0xff] }
  0x61   :  { %901 = vmatprep.subr.mxu1 %v205_v29  ;;  %867 = vmatpush3.msra.mxu0 %v157_v30  ;;  %v571_v21 = vld [vmem:[#allocation7 + $0xe8] sm:$0xff]  ;;  %v570_v22 = vld [vmem:[#allocation7 + $0xe0] sm:$0xff]  ;;  %v565_v27 = vld [vmem:[#allocation7 + $0xb8] sm:$0xff] }
  0x62   :  { %902 = vmatpush3.msra.mxu1 %v189_v31  ;;  %868 = vmatprep.subr.mxu0 %v172_v32  ;;  %v567_v25 = vld [vmem:[#allocation7 + $0xc8] sm:$0xff]  ;;  %v566_v26 = vld [vmem:[#allocation7 + $0xc0] sm:$0xff]  ;;  %v564_v28 = vld [vmem:[#allocation7 + $0xb0] sm:$0xff] }
  0x63   :  { %903 = vmatprep.subr.mxu1 %v204_v33  ;;  %869 = vmatpush3.msra.mxu0 %v156_v34  ;;  %v563_v29 = vld [vmem:[#allocation7 + $0xa8] sm:$0xff]  ;;  %v562_v30 = vld [vmem:[#allocation7 + $0xa0] sm:$0xff]  ;;  %v561_v31 = vld [vmem:[#allocation7 + $0x98] sm:$0xff] }
  0x64   :  { %904 = vmatpush3.msra.mxu1 %v188_v35  ;;  %870 = vmatprep.subr.mxu0 %v171_v36  ;;  %v560_v32 = vld [vmem:[#allocation7 + $0x90] sm:$0xff]  ;;  %v559_v33 = vld [vmem:[#allocation7 + $0x88] sm:$0xff]  ;;  %v558_v34 = vld [vmem:[#allocation7 + $0x80] sm:$0xff] }
  0x65   :  { %905 = vmatprep.subr.mxu1 %v203_v37  ;;  %871 = vmatpush3.msra.mxu0 %v155_v38  ;;  %v557_v35 = vld [vmem:[#allocation7 + $0x78] sm:$0xff]  ;;  %v556_v36 = vld [vmem:[#allocation7 + $0x70] sm:$0xff]  ;;  %v555_v37 = vld [vmem:[#allocation7 + $0x68] sm:$0xff] }
  0x66   :  { %906 = vmatpush3.msra.mxu1 %v187_v39  ;;  %872 = vmatprep.subr.mxu0 %v170_v40  ;;  %v554_v38 = vld [vmem:[#allocation7 + $0x60] sm:$0xff]  ;;  %v553_v39 = vld [vmem:[#allocation7 + $0x58] sm:$0xff]  ;;  %v552_v40 = vld [vmem:[#allocation7 + $0x50] sm:$0xff] }
  0x67   :  { %907 = vmatprep.subr.mxu1 %v202_v41  ;;  %873 = vmatpush3.msra.mxu0 %v154_v43  ;;  %v551_v41 = vld [vmem:[#allocation7 + $0x48] sm:$0xff]  ;;  %v550_v43 = vld [vmem:[#allocation7 + $0x40] sm:$0xff]  ;;  %v689_v56 = vld [vmem:[#allocation8 + $0xf0] sm:$0xff] }
  0x68   :  { %908 = vmatpush3.msra.mxu1 %v186_v44  ;;  %874 = vmatprep.subr.mxu0 %v169_v45  ;;  %v549_v44 = vld [vmem:[#allocation7 + $0x38] sm:$0xff]  ;;  %v548_v45 = vld [vmem:[#allocation7 + $0x30] sm:$0xff] }
  0x69   :  { %909 = vmatprep.subr.mxu1 %v201_v46  ;;  %875 = vmatpush3.msra.mxu0 %v153_v47  ;;  %v547_v46 = vld [vmem:[#allocation7 + $0x28] sm:$0xff]  ;;  %v546_v47 = vld [vmem:[#allocation7 + $0x20] sm:$0xff]  ;;  %v670_v63 = vld [vmem:[#allocation8 + $0x58] sm:$0xff] }
  0x6a   :  { %910 = vmatpush3.msra.mxu1 %v185_v48  ;;  %876 = vmatprep.subr.mxu0 %v168_v49  ;;  %v545_v48 = vld [vmem:[#allocation7 + $0x18] sm:$0xff]  ;;  %v544_v49 = vld [vmem:[#allocation7 + $0x10] sm:$0xff] }
  0x6b   :  { %911 = vmatprep.subr.mxu1 %v200_v50  ;;  %877 = vmatpush3.msra.mxu0 %v152_v52  ;;  %v543_v50 = vld [vmem:[#allocation7 + $0x8] sm:$0xff]  ;;  %v542_v52 = vld [vmem:[#allocation7] sm:$0xff] }
  0x6c   :  { %912 = vmatpush3.msra.mxu1 %v184_v53  ;;  %878 = vmatprep.subr.mxu0 %v167_v54  ;;  %v1093_v53 = vmov 0.0   ;;  %v690_v54 = vld [vmem:[#allocation8 + $0xf8] sm:$0xff] }
  0x6d   :  { %913 = vmatprep.subr.mxu1 %v199_v55  ;;  %879 = vmatpush3.msra.mxu0 %v151_v57  ;;  %v674_v55 = vld [vmem:[#allocation8 + $0x78] sm:$0xff]  ;;  %v673_v57 = vld [vmem:[#allocation8 + $0x70] sm:$0xff] }
  0x6e   :  { %914 = vmatpush3.msra.mxu1 %v183_v58  ;;  %880 = vmatprep.subr.mxu0 %v166_v59  ;;  %v688_v58 = vld [vmem:[#allocation8 + $0xe8] sm:$0xff] }
  0x6f   :  { %915 = vmatprep.subr.mxu1 %v198_v60  ;;  %881 = vmatpush3.msra.mxu0 %v150_v61  ;;  %v672_v59 = vld [vmem:[#allocation8 + $0x68] sm:$0xff]  ;;  %v687_v60 = vld [vmem:[#allocation8 + $0xe0] sm:$0xff] }
  0x70   :  { %916 = vmatpush3.msra.mxu1 %v182_v62  ;;  %882 = vmatprep.subr.mxu0 %v165_v0  ;;  %v671_v61 = vld [vmem:[#allocation8 + $0x60] sm:$0xff]  ;;  %v686_v62 = vld [vmem:[#allocation8 + $0xd8] sm:$0xff]  ;;  %v685_v0 = vld [vmem:[#allocation8 + $0xd0] sm:$0xff] }
  0x71   :  { %917 = vmatprep.subr.mxu1 %v197_v1  ;;  %883 = vmatpush3.msra.mxu0 %v149_v2  ;;  %v669_v1 = vld [vmem:[#allocation8 + $0x50] sm:$0xff]  ;;  %v684_v2 = vld [vmem:[#allocation8 + $0xc8] sm:$0xff] }
  0x72   :  { %918 = vmatpush3.msra.mxu1 %v181_v3  ;;  %884 = vmatprep.subr.mxu0 %v164_v4  ;;  %v668_v3 = vld [vmem:[#allocation8 + $0x48] sm:$0xff]  ;;  %v683_v4 = vld [vmem:[#allocation8 + $0xc0] sm:$0xff] }
  0x73   :  { %919 = vmatprep.subr.mxu1 %v196_v5  ;;  %885 = vmatpush3.msra.mxu0 %v148_v7  ;;  %v667_v5 = vld [vmem:[#allocation8 + $0x40] sm:$0xff]  ;;  %v666_v7 = vld [vmem:[#allocation8 + $0x38] sm:$0xff] }
  0x74   :  { %920 = vmatpush3.msra.mxu1 %v180_v8  ;;  %886 = vmatprep.subr.mxu0 %v163_v10  ;;  %v681_v8 = vld [vmem:[#allocation8 + $0xb0] sm:$0xff]  ;;  %v680_v10 = vld [vmem:[#allocation8 + $0xa8] sm:$0xff] }
  0x75   :  { %921 = vmatprep.subr.mxu1 %v195_v11  ;;  %887 = vmatpush3.msra.mxu0 %v147_v12  ;;  %v664_v11 = vld [vmem:[#allocation8 + $0x28] sm:$0xff]  ;;  %v679_v12 = vld [vmem:[#allocation8 + $0xa0] sm:$0xff] }
  0x76   :  { %922 = vmatpush3.msra.mxu1 %v179_v13  ;;  %888 = vmatprep.subr.mxu0 %v162_v14  ;;  %v663_v13 = vld [vmem:[#allocation8 + $0x20] sm:$0xff] }
  0x77   :  { %923 = vmatprep.subr.mxu1 %v194_v15  ;;  %889 = vmatpush3.msra.mxu0 %v146_v17 }
  0x78   :  { %465 = vmatprep.mubr.f32.mxu0 %v251_v16  ;;  %924 = vmatpush3.msra.mxu1 %v178_v51 }
  0x79   :  { %535 = vmatprep.mubr.f32.mxu1 %v252_v18  ;;  %466 = vmatmul.mubr.f32.vlgmr.msra.gmra.mxu0 %v243_v6  ;;  %v682_v6 = vld [vmem:[#allocation8 + $0xb8] sm:$0xff]  ;;  %v786_v18 = vld [vmem:[%s1178_s2] ss:$0 sm:$0xff] }
  0x7a   :  { %536 = vmatmul.mubr.f32.vlgmr.msra.gmra.mxu1 %v250_v9  ;;  %586 = vmatprep.subr.mxu0 %v573_v19  ;;  %v665_v9 = vld [vmem:[#allocation8 + $0x30] sm:$0xff] }
  0x7b   :  { %587 = vmatpush1.msra.mxu0 %v572_v20  ;;  %650 = vmatprep.mubr.f32.mxu0 %v1093_v53  ;;  %v787_v53 = vld [vmem:[%s1182_s6] ss:$0 sm:$0xff] }
  0x7c   :  { %588 = vmatprep.subr.mxu0 %v571_v21  ;;  %928 = vmatprep.subr.mxu1 %v690_v54 }
  0x7d   :  { %589 = vmatpush1.msra.mxu0 %v570_v22  ;;  %929 = vmatpush3.msra.mxu1 %v674_v55 }
  0x7e   :  { %590 = vmatprep.subr.mxu0 %v569_v23  ;;  %930 = vmatprep.subr.mxu1 %v689_v56 }
  0x7f   :  { %591 = vmatpush1.msra.mxu0 %v568_v24  ;;  %931 = vmatpush3.msra.mxu1 %v673_v57 }
  0x80   :  { %592 = vmatprep.subr.mxu0 %v567_v25  ;;  %932 = vmatprep.subr.mxu1 %v688_v58 }
  0x81   :  { %593 = vmatpush1.msra.mxu0 %v566_v26  ;;  %933 = vmatpush3.msra.mxu1 %v672_v59 }
  0x82   :  { %594 = vmatprep.subr.mxu0 %v565_v27  ;;  %934 = vmatprep.subr.mxu1 %v687_v60 }
  0x83   :  { %595 = vmatpush1.msra.mxu0 %v564_v28  ;;  %935 = vmatpush3.msra.mxu1 %v671_v61 }
  0x84   :  { %596 = vmatprep.subr.mxu0 %v563_v29  ;;  %936 = vmatprep.subr.mxu1 %v686_v62 }
  0x85   :  { %597 = vmatpush1.msra.mxu0 %v562_v30  ;;  %937 = vmatpush3.msra.mxu1 %v670_v63 }
  0x86   :  { %598 = vmatprep.subr.mxu0 %v561_v31  ;;  %938 = vmatprep.subr.mxu1 %v685_v0  ;;  %v678_v31 = vld [vmem:[#allocation8 + $0x98] sm:$0xff] }
  0x87   :  { %599 = vmatpush1.msra.mxu0 %v560_v32  ;;  %939 = vmatpush3.msra.mxu1 %v669_v1  ;;  %v662_v32 = vld [vmem:[#allocation8 + $0x18] sm:$0xff] }
  0x88   :  { %600 = vmatprep.subr.mxu0 %v559_v33  ;;  %940 = vmatprep.subr.mxu1 %v684_v2  ;;  %v677_v33 = vld [vmem:[#allocation8 + $0x90] sm:$0xff] }
  0x89   :  { %601 = vmatpush1.msra.mxu0 %v558_v34  ;;  %941 = vmatpush3.msra.mxu1 %v668_v3  ;;  %v661_v34 = vld [vmem:[#allocation8 + $0x10] sm:$0xff] }
  0x8a   :  { %602 = vmatprep.subr.mxu0 %v557_v35  ;;  %942 = vmatprep.subr.mxu1 %v683_v4  ;;  %v676_v35 = vld [vmem:[#allocation8 + $0x88] sm:$0xff] }
  0x8b   :  { %603 = vmatpush1.msra.mxu0 %v556_v36  ;;  %943 = vmatpush3.msra.mxu1 %v667_v5  ;;  %v660_v36 = vld [vmem:[#allocation8 + $0x8] sm:$0xff] }
  0x8c   :  { %604 = vmatprep.subr.mxu0 %v555_v37  ;;  %944 = vmatprep.subr.mxu1 %v682_v6  ;;  %v675_v37 = vld [vmem:[#allocation8 + $0x80] sm:$0xff] }
  0x8d   :  { %605 = vmatpush1.msra.mxu0 %v554_v38  ;;  %945 = vmatpush3.msra.mxu1 %v666_v7  ;;  %v659_v38 = vld [vmem:[#allocation8] sm:$0xff] }
  0x8e   :  { %606 = vmatprep.subr.mxu0 %v553_v39  ;;  %946 = vmatprep.subr.mxu1 %v681_v8  ;;  %v578_v39 = vsub.s32 0, %v1153_v42 }
  0x8f   :  { %607 = vmatpush1.msra.mxu0 %v552_v40  ;;  %947 = vmatpush3.msra.mxu1 %v665_v9  ;;  %v574_v40 = vld [vmem:[%s1180_s4] sm:$0x3]  ;;  %s775_s4 = sshll.u32 %s1094_s26, 4  ;;  %s776_s4 = int_to_ptr.vmem [resolvable:$true] %s775_s4 }
  0x90   :  { %608 = vmatprep.subr.mxu0 %v551_v41  ;;  %948 = vmatprep.subr.mxu1 %v680_v10  ;;  %v582_v41 = vsub.s32 1, %v1153_v42  ;;  %s1056_s27 = scalar_lea.vmem %s776_s4, 32  ;;  %p1061_p7 = scmp.lt.s32.totalorder %s776_s4, %s776_s4 }
  0x91   :  { %609 = vmatpush1.msra.mxu0 %v550_v43  ;;  %949 = vmatpush3.msra.mxu1 %v664_v11  ;;  %v579_v43 = vrot.slane %v574_v40, %v578_v39  ;;  %p1057_p6 = scmp.ne.s32.totalorder %s776_s4, %s1056_s27  ;;  %p1062_p8 = scmp.lt.s32.totalorder %s1056_s27, %s1056_s27 }
  0x92   :  { %610 = vmatprep.subr.mxu0 %v549_v44  ;;  %950 = vmatprep.subr.mxu1 %v679_v12  ;;  %v583_v44 = vrot.slane %v574_v40, %v582_v41 }
  0x93   :  { %611 = vmatpush1.msra.mxu0 %v548_v45  ;;  %951 = vmatpush3.msra.mxu1 %v663_v13  ;;  %p1063_p9 = por %p1062_p8, %p1061_p7 }
  0x94   :  { %612 = vmatprep.subr.mxu0 %v547_v46  ;;  %952 = vmatprep.subr.mxu1 %v678_v31 }
  0x95   :  { %613 = vmatpush1.msra.mxu0 %v546_v47  ;;  %953 = vmatpush3.msra.mxu1 %v662_v32  ;;  %p1064_p10 = pnand %p1063_p9, %p1057_p6 }
  0x96   :  { %614 = vmatprep.subr.mxu0 %v545_v48  ;;  %954 = vmatprep.subr.mxu1 %v677_v33 }
  0x97   :  { %615 = vmatpush1.msra.mxu0 %v544_v49  ;;  %955 = vmatpush3.msra.mxu1 %v661_v34 }
  0x98   :  { %616 = vmatprep.subr.mxu0 %v543_v50  ;;  %956 = vmatprep.subr.mxu1 %v676_v35 }
  0x99   :  { %617 = vmatpush1.msra.mxu0 %v542_v52  ;;  %957 = vmatpush3.msra.mxu1 %v660_v36 }
  0x9a   :  { %958 = vmatprep.subr.mxu1 %v675_v37 }
  0x9b   :  { %959 = vmatpush3.msra.mxu1 %v659_v38 }
 0x117   :  { %v820_v14 = vpop.f32.mrf.mxu0 }
 0x119   :  { %v855_v15 = vpop.f32.mrf.mxu1  ;;  %v821_v16 = vpop.f32.mrf.mxu0 }
 0x11a   :  { %v822_v17 = vadd.f32 %v821_v16, %v820_v14 }
 0x11b   :  { %v856_v51 = vpop.f32.mrf.mxu1 }
 0x11c   :  { %v328_v19 = vadd.f32 %v822_v17, %v786_v18  ;;  %v857_v20 = vadd.f32 %v856_v51, %v855_v15 }
 0x11e   :  { %v398_v25 = vadd.f32 %v857_v20, %v328_v19 }
 0x139   :  { %v890_v21 = vpop.f32.mrf.mxu0 }
 0x13a   :  { %v925_v22 = vpop.f32.mrf.mxu1 }
 0x13b   :  { %v891_v23 = vpop.f32.mrf.mxu0 }
 0x13c   :  { %v926_v24 = vpop.f32.mrf.mxu1  ;;  %v892_v26 = vadd.f32 %v891_v23, %v890_v21 }
 0x13d   :  { %v927_v28 = vadd.f32 %v926_v24, %v925_v22 }
 0x13e   :  { %v468_v27 = vadd.f32 %v892_v26, %v398_v25 }
 0x140   :  { %v538_v29 = vadd.f32 %v927_v28, %v468_v27 }
 0x142   :  { %v541_v30 = vmax.f32 %v538_v29, 0.0 }
 0x144   :  { %651 = vmatmul.mubr.f32.vlgmr.msra.gmra.mxu0 %v541_v30 }
 0x204   :  { %v652_v45 = vpop.f32.mrf.mxu0 }
 0x205   :  { %v653_v46 = vadd.f32 %v652_v45, %v579_v43 }
 0x206   :  { %v654_v47 = vpop.f32.mrf.mxu0 }
 0x207   :  { %v655_v48 = vadd.f32 %v654_v47, %v583_v44  ;;  %v657_v50 = vmax.f32 %v653_v46, 0.0 }
 0x209   :  { %v658_v49 = vmax.f32 %v655_v48, 0.0 }
 0x20b   :  { %762 = vmatprep.mubr.f32.mxu1 %v658_v49 }
 0x20c   :  { %763 = vmatmul.mubr.f32.vlgmr.msra.gmra.mxu1 %v657_v50 }
 0x2cc   :  { %v960_v52 = vpop.f32.mrf.mxu1 }
 0x2ce   :  { %v961_v54 = vpop.f32.mrf.mxu1 }
 0x2cf   :  { %v962_v55 = vadd.f32 %v961_v54, %v960_v52 }
 0x2d1   :  { %v765_v42 = vadd.f32 %v962_v55, %v787_v53 }
 0x2d3   :  { %768 = vst [vmem:[#allocation10] sm:$0x3] %v765_v42 }
 0x2d4   :  { %1067 = shalt.err (!%p1064_p10)
}
 0x2d5   :  { %778 = dma.vmem_to_hbm [thread:$0]  %s776_s4, 32, %s1183_s7, [#allocation4]  }
 0x2d6   :  { %1082 = dma.done.wait [#allocation4], 32  }
 0x2d7   :  { %1083 = vsyncadd [#allocation4], 4294967264 }
 0x2d8   :  { %782 = vsyncpa [#allocation3], 1 }
 0x2d9   :  { %783 = vsyncpa [#allocation6], 1 }
 0x2da   :  { %784 = vsyncpa [#allocation9], 1 }
 0x2db   :  { %785 = vsyncpa [#allocation4], 1 }

</bundles_post_ra>
